<compile_context>
chip_gen: v6e
topology: v6e:2x2x1
jax: 0.10.0
libtpu: 0.0.40
codegen_flags: <defaults>
</compile_context>

<pallas_src>
import jax
import jax.numpy as jnp
from jax.experimental import pallas as pl
from jax.experimental.pallas import tpu as pltpu

_LANE = 128
_SUBLANE = 8


def _round_up(n, m):
    return ((n + m - 1) // m) * m


def _num_tensorcores():
    # v7x has 2 TensorCores per chip; v5e/v6e have 1. Default to 1 if unknown.
    try:
        kind = jax.devices()[0].device_kind.lower()
        if "v7" in kind:
            return 2
    except Exception:
        pass
    return 1


def mlp_softmax_kernel(x_ref, w1_ref, b1_ref, w2_ref, b2_ref, o_ref):
    # Linear 1: [bb, obs] @ [obs, hidden] + [1, hidden], then ReLU.
    x = x_ref[...]
    h = jnp.dot(x, w1_ref[...], preferred_element_type=jnp.float32) + b1_ref[...]
    h = jnp.maximum(h, 0.0)
    # Linear 2: [bb, hidden] @ [hidden, act] + [1, act].
    logits = jnp.dot(h, w2_ref[...], preferred_element_type=jnp.float32) + b2_ref[...]
    # Numerically stable softmax along the action (lane) axis.
    m = jnp.max(logits, axis=-1, keepdims=True)
    e = jnp.exp(logits - m)
    denom = jnp.sum(e, axis=-1, keepdims=True)
    o_ref[...] = (e * pl.reciprocal(denom, approx=False)).astype(o_ref.dtype)


def network_forward(x, w1, b1, w2, b2, *, block_b=4096):
    """x: [B, obs], w1: [obs, hidden], b1: [hidden] or [1, hidden],
    w2: [hidden, act], b2: [act] or [1, act]."""
    B, obs_dim = x.shape
    hidden = w1.shape[1]
    act_dim = w2.shape[1]
    # PyTorch Linear biases are 1-D; present them as (1, H) rows to the kernel.
    if b1.ndim == 1:
        b1 = b1.reshape(1, hidden)
    if b2.ndim == 1:
        b2 = b2.reshape(1, act_dim)

    # ---- batch tile selection -------------------------------------------
    bb = _round_up(min(block_b, _round_up(B, _SUBLANE)), _SUBLANE)
    num_tc = _num_tensorcores()
    if num_tc >= 2 and B >= 2 * 512:
        # On multi-TC chips aim for >= 2 grid steps per core (>= 512-row tiles)
        # so both cores stay busy with slack for ramp/drain.
        steps = 2 * num_tc if B >= 2 * num_tc * 512 else num_tc
        bb = min(bb, _round_up(pl.cdiv(B, steps), _SUBLANE))
    grid = (pl.cdiv(B, bb),)  # ragged last block handled by Pallas

    # ---- VMEM budget for one grid step (lane-padded f32 layout) ----------
    f32 = 4
    lane_obs = _round_up(obs_dim, _LANE)
    lane_hid = _round_up(hidden, _LANE)
    lane_act = _round_up(act_dim, _LANE)
    est_bytes = (
        2 * bb * lane_obs * f32          # x tiles (double-buffered)
        + 2 * bb * lane_act * f32        # output tiles (double-buffered)
        + 2 * bb * lane_hid * f32        # hidden/logits temporaries
        + (_round_up(obs_dim, _SUBLANE) * lane_hid          # resident params
           + _round_up(hidden, _SUBLANE) * lane_act
           + lane_hid + lane_act) * f32
    )
    vmem_limit = None
    if est_bytes > (14 << 20):  # above the smallest default scoped limit (v5e ~16 MiB)
        vmem_limit = min(int(est_bytes * 13 // 10), 48 << 20)  # safe on all generations

    out = pl.pallas_call(
        mlp_softmax_kernel,
        out_shape=jax.ShapeDtypeStruct((B, act_dim), jnp.float32),
        grid_spec=pltpu.PrefetchScalarGridSpec(
            num_scalar_prefetch=0,
            grid=grid,
            in_specs=[
                # x tiled along batch; weights/biases resident (constant index maps).
                pl.BlockSpec((bb, obs_dim), lambda i: (i, 0)),
                pl.BlockSpec((obs_dim, hidden), lambda i: (0, 0)),
                pl.BlockSpec((1, hidden), lambda i: (0, 0)),
                pl.BlockSpec((hidden, act_dim), lambda i: (0, 0)),
                pl.BlockSpec((1, act_dim), lambda i: (0, 0)),
            ],
            out_specs=pl.BlockSpec((bb, act_dim), lambda i: (i, 0)),
        ),
        compiler_params=pltpu.CompilerParams(
            dimension_semantics=("parallel",),
            vmem_limit_bytes=vmem_limit,
        ),
    )(x, w1, b1, w2, b2)
    return out


if __name__ == "__main__":
    # Small shapes consistent with Network(obs_shape=16, act_shape=4, hidden_size=128).
    batch = 64
    obs_dim = 16
    hidden = 128
    act_dim = 4

    key = jax.random.PRNGKey(0)
    kx, k1, k2, k3, k4 = jax.random.split(key, 5)

    x = jax.random.normal(kx, (batch, obs_dim), dtype=jnp.float32)
    # Deterministic parameter init (Kaiming-ish scaling), stored as [in, out].
    w1 = jax.random.normal(k1, (obs_dim, hidden), dtype=jnp.float32) / jnp.sqrt(obs_dim)
    b1 = jax.random.normal(k2, (hidden,), dtype=jnp.float32) * 0.01
    w2 = jax.random.normal(k3, (hidden, act_dim), dtype=jnp.float32) / jnp.sqrt(hidden)
    b2 = jax.random.normal(k4, (act_dim,), dtype=jnp.float32) * 0.01

    out = network_forward(x, w1, b1, w2, b2)
    out = jax.block_until_ready(out)

    # Reference check in plain JAX (same math as the PyTorch module).
    ref = jax.nn.softmax(jnp.maximum(x @ w1 + b1[None, :], 0.0) @ w2 + b2[None, :], axis=1)
    assert out.shape == (batch, act_dim)
    assert jnp.allclose(out, ref, atol=1e-5, rtol=1e-5)
    assert jnp.allclose(jnp.sum(out, axis=1), 1.0, atol=1e-5)

    print("KERNEL_OK")
</pallas_src>

<mosaic_0001>
module attributes {stable_mosaic.version = 11 : i64} {
  func.func @mlp_softmax_kernel(%arg0: i32, %arg1: memref<64x16xf32, #tpu.memory_space<vmem>>, %arg2: memref<16x128xf32, #tpu.memory_space<vmem>>, %arg3: memref<1x128xf32, #tpu.memory_space<vmem>>, %arg4: memref<128x4xf32, #tpu.memory_space<vmem>>, %arg5: memref<1x4xf32, #tpu.memory_space<vmem>>, %arg6: memref<64x4xf32, #tpu.memory_space<vmem>>) attributes {dimension_semantics = [#tpu.dimension_semantics<parallel>], iteration_bounds = array<i64: 1>, scalar_prefetch = 0 : i64, scratch_operands = 0 : i64, tpu.core_type = #tpu.core_type<tc>, window_params = [{transform_indices = @transform_0, window_bounds = array<i64: 64, 16>}, {pipeline_mode = #tpu.pipeline_mode<synchronous>, transform_indices = @transform_1, window_bounds = array<i64: 16, 128>}, {pipeline_mode = #tpu.pipeline_mode<synchronous>, transform_indices = @transform_2, window_bounds = array<i64: 1, 128>}, {pipeline_mode = #tpu.pipeline_mode<synchronous>, transform_indices = @transform_3, window_bounds = array<i64: 128, 4>}, {pipeline_mode = #tpu.pipeline_mode<synchronous>, transform_indices = @transform_4, window_bounds = array<i64: 1, 4>}, {transform_indices = @transform_5, window_bounds = array<i64: 64, 4>}]} {
    %c0 = arith.constant 0 : index
    %c0_0 = arith.constant 0 : index
    %0 = vector.load %arg1[%c0, %c0_0] : memref<64x16xf32, #tpu.memory_space<vmem>>, vector<64x16xf32>
    %c0_1 = arith.constant 0 : index
    %c0_2 = arith.constant 0 : index
    %1 = vector.load %arg2[%c0_1, %c0_2] : memref<16x128xf32, #tpu.memory_space<vmem>>, vector<16x128xf32>
    %cst = arith.constant dense<0.000000e+00> : vector<64x128xf32>
    %2 = tpu.matmul %0, %1, %cst {dimension_numbers = #tpu.dot_dimension_numbers<[1], [0], [0], [1], [0, 0, 1, 1], [], []>} : vector<64x16xf32>, vector<16x128xf32>, vector<64x128xf32> -> vector<64x128xf32>
    %c0_3 = arith.constant 0 : index
    %c0_4 = arith.constant 0 : index
    %3 = vector.load %arg3[%c0_3, %c0_4] : memref<1x128xf32, #tpu.memory_space<vmem>>, vector<1x128xf32>
    %4 = vector.broadcast %3 : vector<1x128xf32> to vector<64x128xf32>
    %5 = arith.addf %2, %4 : vector<64x128xf32>
    %cst_5 = arith.constant 0.000000e+00 : f32
    %6 = vector.broadcast %cst_5 : f32 to vector<64x128xf32>
    %7 = arith.maximumf %5, %6 : vector<64x128xf32>
    %c0_6 = arith.constant 0 : index
    %c0_7 = arith.constant 0 : index
    %8 = vector.load %arg4[%c0_6, %c0_7] : memref<128x4xf32, #tpu.memory_space<vmem>>, vector<128x4xf32>
    %cst_8 = arith.constant dense<0.000000e+00> : vector<64x4xf32>
    %9 = tpu.matmul %7, %8, %cst_8 {dimension_numbers = #tpu.dot_dimension_numbers<[1], [0], [0], [1], [0, 0, 1, 1], [], []>} : vector<64x128xf32>, vector<128x4xf32>, vector<64x4xf32> -> vector<64x4xf32>
    %c0_9 = arith.constant 0 : index
    %c0_10 = arith.constant 0 : index
    %10 = vector.load %arg5[%c0_9, %c0_10] : memref<1x4xf32, #tpu.memory_space<vmem>>, vector<1x4xf32>
    %11 = vector.broadcast %10 : vector<1x4xf32> to vector<64x4xf32>
    %12 = arith.addf %9, %11 : vector<64x4xf32>
    %cst_11 = arith.constant dense<0xFF800000> : vector<64xf32>
    %13 = vector.multi_reduction <maximumf>, %12, %cst_11 [1] : vector<64x4xf32> to vector<64xf32>
    %14 = vector.shape_cast %13 : vector<64xf32> to vector<64x1xf32>
    %15 = vector.broadcast %14 : vector<64x1xf32> to vector<64x4xf32>
    %16 = arith.subf %12, %15 : vector<64x4xf32>
    %17 = math.exp %16 : vector<64x4xf32>
    %cst_12 = arith.constant dense<0.000000e+00> : vector<64xf32>
    %18 = vector.multi_reduction <add>, %17, %cst_12 [1] : vector<64x4xf32> to vector<64xf32>
    %19 = vector.shape_cast %18 : vector<64xf32> to vector<64x1xf32>
    %20 = tpu.reciprocal %19 : vector<64x1xf32> -> vector<64x1xf32>
    %21 = vector.broadcast %20 : vector<64x1xf32> to vector<64x4xf32>
    %22 = arith.mulf %17, %21 : vector<64x4xf32>
    %c0_13 = arith.constant 0 : index
    %c0_14 = arith.constant 0 : index
    %23 = vector.load %arg6[%c0_13, %c0_14] : memref<64x4xf32, #tpu.memory_space<vmem>>, vector<64x4xf32>
    tpu.vector_store %arg6[%c0_13, %c0_14], %22 {strides = array<i32>} : memref<64x4xf32, #tpu.memory_space<vmem>>, vector<64x4xf32>,
    return
  }
  func.func @transform_0(%arg0: i32) -> (i32, i32) {
    %c0_i32 = arith.constant 0 : i32
    %c0_i32_0 = arith.constant 0 : i32
    return %arg0, %c0_i32 : i32, i32
  }
  func.func @transform_1(%arg0: i32) -> (i32, i32) {
    %c0_i32 = arith.constant 0 : i32
    %c0_i32_0 = arith.constant 0 : i32
    %c0_i32_1 = arith.constant 0 : i32
    return %c0_i32, %c0_i32_0 : i32, i32
  }
  func.func @transform_2(%arg0: i32) -> (i32, i32) {
    %c0_i32 = arith.constant 0 : i32
    %c0_i32_0 = arith.constant 0 : i32
    %c0_i32_1 = arith.constant 0 : i32
    return %c0_i32, %c0_i32_0 : i32, i32
  }
  func.func @transform_3(%arg0: i32) -> (i32, i32) {
    %c0_i32 = arith.constant 0 : i32
    %c0_i32_0 = arith.constant 0 : i32
    %c0_i32_1 = arith.constant 0 : i32
    return %c0_i32, %c0_i32_0 : i32, i32
  }
  func.func @transform_4(%arg0: i32) -> (i32, i32) {
    %c0_i32 = arith.constant 0 : i32
    %c0_i32_0 = arith.constant 0 : i32
    %c0_i32_1 = arith.constant 0 : i32
    return %c0_i32, %c0_i32_0 : i32, i32
  }
  func.func @transform_5(%arg0: i32) -> (i32, i32) {
    %c0_i32 = arith.constant 0 : i32
    %c0_i32_0 = arith.constant 0 : i32
    return %arg0, %c0_i32 : i32, i32
  }
}

</mosaic_0001>

<bundles_post_ra>
// kernel: tpu_custom_call.1
= control target key start
LH: loop header
LB: loop body
LE: loop exit
PB: predicated region body
PF: predicated region fallthrough
CT: control target
= control target key end

     0   :  { %vm37_vm0 = vcmask 130048   ;;  %vm303_vm1 = vcmask 31744   ;;  %s742_s1 = inlined_call_operand.vmem [shape: f32[16,128], index: 1, kind: input, shape index: {}]   ;;  %s743_s0 = inlined_call_operand.vmem [shape: f32[64,16], index: 0, kind: input, shape index: {}]   ;;  %s744_s3 = inlined_call_operand.vmem [shape: f32[128,4], index: 3, kind: input, shape index: {}]   ;;  %s745_s2 = inlined_call_operand.vmem [shape: f32[1,128], index: 2, kind: input, shape index: {}]   ;;  %s746_s4 = inlined_call_operand.vmem [shape: f32[1,4], index: 4, kind: input, shape index: {}]   ;;  %s747_s5 = inlined_call_operand.vmem [shape: f32[64,4], index: 5, kind: output, shape index: {}]  }
   0x1   :  { %v29_v0 = vld [vmem:[%s742_s1 + $0x8] sm:$0xff]  ;;  %v28_v1 = vld [vmem:[%s742_s1] sm:$0xff]  ;;  %v22_v4 = vld [vmem:[%s743_s0 + $0x10] sm:$0xff] }
   0x2   :  { %v20_v2 = vld [vmem:[%s743_s0] sm:$0xff]  ;;  %448 = vmatprep.subr.mxu0 %v29_v0  ;;  %v21_v3 = vld [vmem:[%s743_s0 + $0x8] sm:$0xff]  ;;  %v190_v5 = vld [vmem:[%s744_s3 + $0x78] sm:$0xff] }
   0x3   :  { %452 = vmatprep.mubr.msk.f32.mxu0 %vm37_vm0, %v20_v2  ;;  %449 = vmatpush3.msra.mxu0 %v29_v0  ;;  %v189_v6 = vld [vmem:[%s744_s3 + $0x70] sm:$0xff]  ;;  %v23_v7 = vld [vmem:[%s743_s0 + $0x18] sm:$0xff]  ;;  %v188_v8 = vld [vmem:[%s744_s3 + $0x68] sm:$0xff] }
   0x4   :  { %450 = vmatprep.subr.mxu0 %v28_v1  ;;  %508 = vmatprep.subr.mxu1 %v190_v5  ;;  %v24_v9 = vld [vmem:[%s743_s0 + $0x20] sm:$0xff]  ;;  %v25_v11 = vld [vmem:[%s743_s0 + $0x28] sm:$0xff]  ;;  %v186_v12 = vld [vmem:[%s744_s3 + $0x58] sm:$0xff] }
   0x5   :  { %451 = vmatpush3.msra.mxu0 %v28_v1  ;;  %524 = vmatpush3.msra.mxu1 %v190_v5  ;;  %v187_v10 = vld [vmem:[%s744_s3 + $0x60] sm:$0xff]  ;;  %v26_v13 = vld [vmem:[%s743_s0 + $0x30] sm:$0xff]  ;;  %v27_v15 = vld [vmem:[%s743_s0 + $0x38] sm:$0xff] }
   0x6   :  { %453 = vmatmul.mubr.msk.f32.vlgmr.msra.gmra.mxu0 %vm37_vm0, %v21_v3  ;;  %464 = vmatprep.subr.mxu0 %v190_v5  ;;  %v185_v14 = vld [vmem:[%s744_s3 + $0x50] sm:$0xff]  ;;  %v184_v16 = vld [vmem:[%s744_s3 + $0x48] sm:$0xff]  ;;  %v183_v17 = vld [vmem:[%s744_s3 + $0x40] sm:$0xff] }
   0x7   :  { %455 = vmatprep.mubr.msk.f32.mxu0 %vm37_vm0, %v22_v4  ;;  %465 = vmatpush3.msra.mxu0 %v190_v5  ;;  %v182_v18 = vld [vmem:[%s744_s3 + $0x38] sm:$0xff]  ;;  %v181_v19 = vld [vmem:[%s744_s3 + $0x30] sm:$0xff]  ;;  %v180_v20 = vld [vmem:[%s744_s3 + $0x28] sm:$0xff] }
   0x8   :  { %466 = vmatprep.subr.mxu0 %v189_v6  ;;  %509 = vmatprep.subr.mxu1 %v189_v6  ;;  %v179_v21 = vld [vmem:[%s744_s3 + $0x20] sm:$0xff]  ;;  %v178_v22 = vld [vmem:[%s744_s3 + $0x18] sm:$0xff]  ;;  %v177_v23 = vld [vmem:[%s744_s3 + $0x10] sm:$0xff] }
   0x9   :  { %467 = vmatpush3.msra.mxu0 %v189_v6  ;;  %525 = vmatpush3.msra.mxu1 %v189_v6  ;;  %v176_v24 = vld [vmem:[%s744_s3 + $0x8] sm:$0xff]  ;;  %v175_v25 = vld [vmem:[%s744_s3] sm:$0xff] }
   0xa   :  { %456 = vmatmul.mubr.msk.f32.gmra.mxu0 %vm37_vm0, %v23_v7  ;;  %468 = vmatprep.subr.mxu0 %v188_v8  ;;  %v404_v26 = vld [vmem:[%s745_s2] ss:$0 sm:$0xff] }
   0xb   :  { %458 = vmatprep.mubr.msk.f32.mxu0 %vm37_vm0, %v24_v9  ;;  %469 = vmatpush3.msra.mxu0 %v188_v8  ;;  %v413_v51 = vld [vmem:[%s746_s4] ss:$0 sm:$0xff] }
   0xc   :  { %470 = vmatprep.subr.mxu0 %v187_v10  ;;  %510 = vmatprep.subr.mxu1 %v188_v8 }
   0xd   :  { %471 = vmatpush3.msra.mxu0 %v187_v10  ;;  %526 = vmatpush3.msra.mxu1 %v188_v8 }
   0xe   :  { %459 = vmatmul.mubr.msk.f32.gmra.mxu0 %vm37_vm0, %v25_v11  ;;  %472 = vmatprep.subr.mxu0 %v186_v12 }
   0xf   :  { %461 = vmatprep.mubr.msk.f32.mxu0 %vm37_vm0, %v26_v13  ;;  %473 = vmatpush3.msra.mxu0 %v186_v12 }
  0x10   :  { %511 = vmatprep.subr.mxu1 %v187_v10  ;;  %474 = vmatprep.subr.mxu0 %v185_v14 }
  0x11   :  { %527 = vmatpush3.msra.mxu1 %v187_v10  ;;  %475 = vmatpush3.msra.mxu0 %v185_v14 }
  0x12   :  { %462 = vmatmul.mubr.msk.f32.gmra.mxu0 %vm37_vm0, %v27_v15  ;;  %512 = vmatprep.subr.mxu1 %v186_v12 }
  0x13   :  { %528 = vmatpush3.msra.mxu1 %v186_v12  ;;  %476 = vmatprep.subr.mxu0 %v184_v16 }
  0x14   :  { %513 = vmatprep.subr.mxu1 %v185_v14  ;;  %477 = vmatpush3.msra.mxu0 %v184_v16 }
  0x15   :  { %529 = vmatpush3.msra.mxu1 %v185_v14  ;;  %478 = vmatprep.subr.mxu0 %v183_v17 }
  0x16   :  { %514 = vmatprep.subr.mxu1 %v184_v16  ;;  %479 = vmatpush3.msra.mxu0 %v183_v17 }
  0x17   :  { %530 = vmatpush3.msra.mxu1 %v184_v16  ;;  %480 = vmatprep.subr.mxu0 %v182_v18 }
  0x18   :  { %515 = vmatprep.subr.mxu1 %v183_v17  ;;  %481 = vmatpush3.msra.mxu0 %v182_v18 }
  0x19   :  { %531 = vmatpush3.msra.mxu1 %v183_v17  ;;  %482 = vmatprep.subr.mxu0 %v181_v19 }
  0x1a   :  { %516 = vmatprep.subr.mxu1 %v182_v18  ;;  %483 = vmatpush3.msra.mxu0 %v181_v19 }
  0x1b   :  { %532 = vmatpush3.msra.mxu1 %v182_v18  ;;  %484 = vmatprep.subr.mxu0 %v180_v20 }
  0x1c   :  { %517 = vmatprep.subr.mxu1 %v181_v19  ;;  %485 = vmatpush3.msra.mxu0 %v180_v20 }
  0x1d   :  { %533 = vmatpush3.msra.mxu1 %v181_v19  ;;  %486 = vmatprep.subr.mxu0 %v179_v21 }
  0x1e   :  { %518 = vmatprep.subr.mxu1 %v180_v20  ;;  %487 = vmatpush3.msra.mxu0 %v179_v21 }
  0x1f   :  { %534 = vmatpush3.msra.mxu1 %v180_v20  ;;  %488 = vmatprep.subr.mxu0 %v178_v22 }
  0x20   :  { %519 = vmatprep.subr.mxu1 %v179_v21  ;;  %489 = vmatpush3.msra.mxu0 %v178_v22 }
  0x21   :  { %535 = vmatpush3.msra.mxu1 %v179_v21  ;;  %490 = vmatprep.subr.mxu0 %v177_v23 }
  0x22   :  { %520 = vmatprep.subr.mxu1 %v178_v22  ;;  %491 = vmatpush3.msra.mxu0 %v177_v23 }
  0x23   :  { %536 = vmatpush3.msra.mxu1 %v178_v22  ;;  %492 = vmatprep.subr.mxu0 %v176_v24 }
  0x24   :  { %521 = vmatprep.subr.mxu1 %v177_v23  ;;  %493 = vmatpush3.msra.mxu0 %v176_v24 }
  0x25   :  { %537 = vmatpush3.msra.mxu1 %v177_v23  ;;  %494 = vmatprep.subr.mxu0 %v175_v25 }
  0x26   :  { %522 = vmatprep.subr.mxu1 %v176_v24  ;;  %495 = vmatpush3.msra.mxu0 %v175_v25 }
  0x27   :  { %538 = vmatpush3.msra.mxu1 %v176_v24 }
  0x28   :  { %523 = vmatprep.subr.mxu1 %v175_v25 }
  0x29   :  { %539 = vmatpush3.msra.mxu1 %v175_v25 }
  0xc6   :  { %v454_v27 = vpop.f32.mrf.mxu0 }
  0xc7   :  { %v134_v28 = vadd.f32 %v454_v27, %v404_v26 }
  0xc8   :  { %v128_v29 = vpop.f32.mrf.mxu0 }
  0xc9   :  { %v129_v30 = vadd.f32 %v404_v26, %v128_v29  ;;  %v168_v33 = vmax.f32 %v134_v28, 0.0 }
  0xca   :  { %v457_v31 = vpop.f32.mrf.mxu0 }
  0xcb   :  { %v167_v32 = vmax.f32 %v129_v30, 0.0  ;;  %v144_v34 = vadd.f32 %v457_v31, %v404_v26 }
  0xcc   :  { %v138_v35 = vpop.f32.mrf.mxu0 }
  0xcd   :  { %496 = vmatprep.mubr.f32.mxu0 %v167_v32  ;;  %v139_v36 = vadd.f32 %v404_v26, %v138_v35  ;;  %v170_v40 = vmax.f32 %v144_v34, 0.0 }
  0xce   :  { %v460_v37 = vpop.f32.mrf.mxu0  ;;  %497 = vmatmul.mubr.f32.vlgmr.msra.gmra.mxu0 %v168_v33 }
  0xcf   :  { %v154_v38 = vadd.f32 %v460_v37, %v404_v26  ;;  %v169_v39 = vmax.f32 %v139_v36, 0.0 }
  0xd0   :  { %v148_v41 = vpop.f32.mrf.mxu0 }
  0xd1   :  { %v149_v42 = vadd.f32 %v404_v26, %v148_v41  ;;  %499 = vmatprep.mubr.f32.mxu1 %v169_v39  ;;  %v172_v43 = vmax.f32 %v154_v38, 0.0 }
  0xd2   :  { %v463_v44 = vpop.f32.mrf.mxu0  ;;  %500 = vmatmul.mubr.f32.vlgmr.msra.gmra.mxu1 %v170_v40 }
  0xd3   :  { %v171_v45 = vmax.f32 %v149_v42, 0.0  ;;  %v164_v46 = vadd.f32 %v463_v44, %v404_v26 }
  0xd4   :  { %v158_v47 = vpop.f32.mrf.mxu0 }
  0xd5   :  { %v159_v48 = vadd.f32 %v404_v26, %v158_v47  ;;  %502 = vmatprep.mubr.f32.mxu1 %v171_v45  ;;  %v174_v49 = vmax.f32 %v164_v46, 0.0 }
  0xd6   :  { %503 = vmatmul.mubr.f32.gmra.mxu1 %v172_v43 }
  0xd7   :  { %v173_v50 = vmax.f32 %v159_v48, 0.0 }
  0xd9   :  { %505 = vmatprep.mubr.f32.mxu1 %v173_v50 }
  0xda   :  { %506 = vmatmul.mubr.f32.gmra.mxu1 %v174_v49 }
 0x18e   :  { %v498_v52 = vpop.f32.mrf.mxu0 }
 0x18f   :  { %v270_v53 = vadd.f32 %v498_v52, %v413_v51 }
 0x190   :  { %v264_v54 = vpop.f32.mrf.mxu0 }
 0x191   :  { %v265_v55 = vadd.f32 %v413_v51, %v264_v54  ;;  %v307_v56 = vsel %vm303_vm1, %v270_v53, -inf }
 0x192   :  { %v501_v57 = vpop.f32.mrf.mxu1  ;;  %308 = vmax.xlane.f32.xlu0 %v307_v56 }
 0x193   :  { %v280_v58 = vadd.f32 %v501_v57, %v413_v51  ;;  %v304_v62 = vsel %vm303_vm1, %v265_v55, -inf }
 0x194   :  { %v274_v59 = vpop.f32.mrf.mxu1 }
 0x195   :  { %v275_v60 = vadd.f32 %v413_v51, %v274_v59  ;;  %v313_v61 = vsel %vm303_vm1, %v280_v58, -inf }
 0x196   :  { %314 = vmax.xlane.f32.xlu1 %v313_v61  ;;  %v504_v63 = vpop.f32.mrf.mxu1  ;;  %305 = vmax.xlane.f32.xlu0 %v304_v62 }
 0x197   :  { %v290_v1 = vadd.f32 %v504_v63, %v413_v51  ;;  %v310_v3 = vsel %vm303_vm1, %v275_v60, -inf }
 0x198   :  { %v284_v0 = vpop.f32.mrf.mxu1 }
 0x199   :  { %v285_v2 = vadd.f32 %v413_v51, %v284_v0  ;;  %v319_v9 = vsel %vm303_vm1, %v290_v1, -inf }
 0x19a   :  { %v507_v4 = vpop.f32.mrf.mxu1  ;;  %311 = vmax.xlane.f32.xlu1 %v310_v3 }
 0x19b   :  { %v316_v5 = vsel %vm303_vm1, %v285_v2, -inf  ;;  %v300_v7 = vadd.f32 %v507_v4, %v413_v51 }
 0x19c   :  { %v294_v6 = vpop.f32.mrf.mxu1  ;;  %317 = vmax.xlane.f32.xlu0 %v316_v5 }
 0x19d   :  { %v295_v8 = vadd.f32 %v413_v51, %v294_v6  ;;  %v325_v11 = vsel %vm303_vm1, %v300_v7, -inf }
 0x19e   :  { %320 = vmax.xlane.f32.xlu1 %v319_v9 }
 0x19f   :  { %v322_v10 = vsel %vm303_vm1, %v295_v8, -inf }
 0x1a0   :  { %323 = vmax.xlane.f32.xlu0 %v322_v10 }
 0x1a2   :  { %326 = vmax.xlane.f32.xlu1 %v325_v11 }
 0x21b   :  { %v309_v12 = vpop.xlane.xlu0 %308 }
 0x21c   :  { %v329_v13 = vsub.f32 %v270_v53, %v309_v12 }
 0x21e   :  { %v338_v14 = vmul.f32 1.442695, %v329_v13 }
 0x21f   :  { %v315_v15 = vpop.xlane.xlu1 %314  ;;  %v306_v16 = vpop.xlane.xlu0 %305 }
 0x220   :  { %540 = vpow2.f32 %v338_v14  ;;  %v331_v17 = vsub.f32 %v280_v58, %v315_v15  ;;  %v328_v18 = vsub.f32 %v265_v55, %v306_v16 }
 0x222   :  { %v342_v19 = vmul.f32 1.442695, %v331_v17  ;;  %v336_v20 = vmul.f32 1.442695, %v328_v18 }
 0x223   :  { %v312_v21 = vpop.xlane.xlu1 %311 }
 0x224   :  { %542 = vpow2.f32 %v342_v19  ;;  %v330_v22 = vsub.f32 %v275_v60, %v312_v21 }
 0x225   :  { %544 = vpow2.f32 %v336_v20  ;;  %v318_v23 = vpop.xlane.xlu0 %317 }
 0x226   :  { %v340_v24 = vmul.f32 1.442695, %v330_v22  ;;  %v332_v25 = vsub.f32 %v285_v2, %v318_v23 }
 0x227   :  { %v321_v26 = vpop.xlane.xlu1 %320 }
 0x228   :  { %546 = vpow2.f32 %v340_v24  ;;  %v344_v27 = vmul.f32 1.442695, %v332_v25  ;;  %v333_v28 = vsub.f32 %v290_v1, %v321_v26 }
 0x229   :  { %v324_v29 = vpop.xlane.xlu0 %323 }
 0x22a   :  { %v346_v30 = vmul.f32 1.442695, %v333_v28  ;;  %v334_v31 = vsub.f32 %v295_v8, %v324_v29  ;;  %548 = vpow2.f32 %v344_v27 }
 0x22b   :  { %v327_v32 = vpop.xlane.xlu1 %326 }
 0x22c   :  { %550 = vpow2.f32 %v346_v30  ;;  %v348_v33 = vmul.f32 1.442695, %v334_v31  ;;  %v335_v34 = vsub.f32 %v300_v7, %v327_v32 }
 0x22d   :  { %v541_v35 = vpop.eup %540 }
 0x22e   :  { %v350_v36 = vmul.f32 1.442695, %v335_v34  ;;  %v355_v37 = vsel %vm303_vm1, %v541_v35, 0.0  ;;  %552 = vpow2.f32 %v348_v33 }
 0x22f   :  { %356 = vadd.xlane.f32.xlu1 %v355_v37 }
 0x230   :  { %554 = vpow2.f32 %v350_v36 }
 0x231   :  { %v543_v38 = vpop.eup %542 }
 0x232   :  { %v545_v39 = vpop.eup %544  ;;  %v361_v40 = vsel %vm303_vm1, %v543_v38, 0.0 }
 0x233   :  { %362 = vadd.xlane.f32.xlu1 %v361_v40  ;;  %v352_v41 = vsel %vm303_vm1, %v545_v39, 0.0 }
 0x234   :  { %353 = vadd.xlane.f32.xlu0 %v352_v41 }
 0x235   :  { %v547_v42 = vpop.eup %546 }
 0x236   :  { %v358_v43 = vsel %vm303_vm1, %v547_v42, 0.0 }
 0x237   :  { %v549_v44 = vpop.eup %548 }
 0x238   :  { %359 = vadd.xlane.f32.xlu0 %v358_v43  ;;  %v364_v47 = vsel %vm303_vm1, %v549_v44, 0.0 }
 0x239   :  { %v551_v45 = vpop.eup %550 }
 0x23a   :  { %v367_v46 = vsel %vm303_vm1, %v551_v45, 0.0 }
 0x23b   :  { %368 = vadd.xlane.f32.xlu1 %v367_v46  ;;  %v553_v48 = vpop.eup %552 }
 0x23c   :  { %365 = vadd.xlane.f32.xlu0 %v364_v47  ;;  %v370_v51 = vsel %vm303_vm1, %v553_v48, 0.0 }
 0x23d   :  { %v555_v49 = vpop.eup %554 }
 0x23e   :  { %v373_v50 = vsel %vm303_vm1, %v555_v49, 0.0 }
 0x23f   :  { %374 = vadd.xlane.f32.xlu1 %v373_v50 }
 0x240   :  { %371 = vadd.xlane.f32.xlu0 %v370_v51 }
 0x2b8   :  { %v357_v52 = vpop.xlane.xlu1 %356 }
 0x2b9   :  { %556 = vrcp.f32 %v357_v52 }
 0x2bc   :  { %v363_v53 = vpop.xlane.xlu1 %362 }
 0x2bd   :  { %558 = vrcp.f32 %v363_v53  ;;  %v354_v54 = vpop.xlane.xlu0 %353 }
 0x2be   :  { %560 = vrcp.f32 %v354_v54 }
 0x2c1   :  { %v360_v55 = vpop.xlane.xlu0 %359 }
 0x2c2   :  { %562 = vrcp.f32 %v360_v55 }
 0x2c4   :  { %v369_v56 = vpop.xlane.xlu1 %368 }
 0x2c5   :  { %564 = vrcp.f32 %v369_v56  ;;  %v366_v57 = vpop.xlane.xlu0 %365 }
 0x2c6   :  { %v557_v58 = vpop.eup %556  ;;  %566 = vrcp.f32 %v366_v57 }
 0x2c7   :  { %v385_v59 = vmul.f32 %v557_v58, %v541_v35 }
 0x2c8   :  { %v375_v60 = vpop.xlane.xlu1 %374 }
 0x2c9   :  { %393 = vst.msk [vmem:[%s747_s5 + $0x8] sm:$0xff] %vm303_vm1, %v385_v59  ;;  %568 = vrcp.f32 %v375_v60  ;;  %v372_v61 = vpop.xlane.xlu0 %371 }
 0x2ca   :  { %v559_v62 = vpop.eup %558  ;;  %570 = vrcp.f32 %v372_v61 }
 0x2cb   :  { %v561_v63 = vpop.eup %560  ;;  %v387_v0 = vmul.f32 %v559_v62, %v543_v38 }
 0x2cc   :  { %v384_v1 = vmul.f32 %v561_v63, %v545_v39 }
 0x2cd   :  { %395 = vst.msk [vmem:[%s747_s5 + $0x18] sm:$0xff] %vm303_vm1, %v387_v0 }
 0x2ce   :  { %392 = vst.msk [vmem:[%s747_s5] sm:$0xff] %vm303_vm1, %v384_v1 }
 0x2cf   :  { %v563_v2 = vpop.eup %562 }
 0x2d0   :  { %v386_v3 = vmul.f32 %v563_v2, %v547_v42 }
 0x2d2   :  { %v565_v4 = vpop.eup %564  ;;  %394 = vst.msk [vmem:[%s747_s5 + $0x10] sm:$0xff] %vm303_vm1, %v386_v3 }
 0x2d3   :  { %v567_v5 = vpop.eup %566  ;;  %v389_v6 = vmul.f32 %v565_v4, %v551_v45 }
 0x2d4   :  { %v388_v7 = vmul.f32 %v567_v5, %v549_v44 }
 0x2d5   :  { %397 = vst.msk [vmem:[%s747_s5 + $0x28] sm:$0xff] %vm303_vm1, %v389_v6 }
 0x2d6   :  { %v569_v8 = vpop.eup %568  ;;  %396 = vst.msk [vmem:[%s747_s5 + $0x20] sm:$0xff] %vm303_vm1, %v388_v7 }
 0x2d7   :  { %v571_v9 = vpop.eup %570  ;;  %v391_v10 = vmul.f32 %v569_v8, %v555_v49 }
 0x2d8   :  { %v390_v11 = vmul.f32 %v571_v9, %v553_v48 }
 0x2d9   :  { %399 = vst.msk [vmem:[%s747_s5 + $0x38] sm:$0xff] %vm303_vm1, %v391_v10 }
 0x2da   :  { %398 = vst.msk [vmem:[%s747_s5 + $0x30] sm:$0xff] %vm303_vm1, %v390_v11 }

</bundles_post_ra>
